<compile_context>
chip_gen: v6e
topology: v6e:2x2x1
jax: 0.10.0
libtpu: 0.0.40
codegen_flags: <defaults>
</compile_context>

<pallas_src>
import jax
import jax.numpy as jnp
from jax.experimental import pallas as pl
from jax.experimental.pallas import tpu as pltpu

LAYER_DRUG = 3
DIM_DRUG = 32
IN_DIM = 75   # drug atom feature dim (GIN layer 0 input)
LANE = 128
NEG_BIG = jnp.float32(-3.0e38)


def _round_up(x, m):
    return (x + m - 1) // m * m


def gnn_drug_kernel(adj_ref, x_ref, bias_ref, *rest):
    """Fused GIN stack + JK-cat + global max pool.

    adj_ref : [N, N]    bf16 dense aggregation matrix with self term folded in:
                        adj_hat[i, j] = #edges (j -> i) + (1 + eps) * (i == j), eps = 0
    x_ref   : [N, Fp]   bf16 node features, lane-padded (75 -> 128) with zeros
    bias_ref: [G, N, 1] f32 pooling bias: 0 where batch[n] == g, -3e38 otherwise
    rest    : per layer (w1, b1, w2, b2, bn_scale, bn_shift) f32, then out_ref [G, OUT_PAD] f32
    """
    out_ref = rest[-1]
    params = rest[:-1]
    num_layers = len(params) // 6
    dim = params[2].shape[1]          # w2 of layer 0 is [D, D]

    adj = adj_ref[...]                # bf16, resident across all layers
    x_agg = x_ref[...]                # bf16 aggregation operand
    pool_bias = bias_ref[...]         # [G, N, 1] f32 (hoisted out of the layer loop)

    # Zero the whole (lane-padded) output once; per-layer slices overwrite the live columns.
    out_ref[...] = jnp.zeros_like(out_ref)

    for i in range(num_layers):
        w1, b1, w2, b2, bn_s, bn_t = params[6 * i:6 * (i + 1)]

        # --- GINConv aggregation: adj_hat @ x == (1+eps)*x + sum_neighbors(x)  (bf16 MXU, f32 acc)
        agg = jnp.dot(adj, x_agg, preferred_element_type=jnp.float32)

        # --- GIN MLP block: Linear -> ReLU -> Linear (f32) ---
        h = jnp.dot(agg, w1[...], preferred_element_type=jnp.float32) + b1[...]
        h = jnp.maximum(h, 0.0)
        h = jnp.dot(h, w2[...], preferred_element_type=jnp.float32) + b2[...]

        # --- dropout(p=0.3): identity in eval mode, then ReLU ---
        # TODO(synk): training-mode dropout (stochastic masking) is not reproduced; eval mode only.
        h = jnp.maximum(h, 0.0)

        # --- BatchNorm1d (eval): pre-folded scale/shift ---
        h = h * bn_s[...] + bn_t[...]

        # --- global max pool of this layer's JK slice, vectorized over graphs ---
        # pooled[g, d] = max_n (h[n, d] + bias[g, n]);   bias = 0 (member) or -3e38 (non-member)
        pooled = jnp.max(h[None, :, :] + pool_bias, axis=1)          # [G, D]
        out_ref[:, i * dim:(i + 1) * dim] = pooled                   # write straight into JK slice

        x_agg = h.astype(jnp.bfloat16)                               # next layer's aggregation input


def init_params(key, layer_drug=LAYER_DRUG, dim_drug=DIM_DRUG, in_dim=IN_DIM):
    """Deterministic synthetic parameters matching the module's shapes."""
    params = []
    eps = 1e-5
    for i in range(layer_drug):
        fin = in_dim if i == 0 else dim_drug
        key, k1, k2, k3, k4, k5, k6 = jax.random.split(key, 7)
        w1 = jax.random.normal(k1, (fin, dim_drug), jnp.float32) / jnp.sqrt(float(fin))
        b1 = 0.1 * jax.random.normal(k2, (1, dim_drug), jnp.float32)
        w2 = jax.random.normal(k3, (dim_drug, dim_drug), jnp.float32) / jnp.sqrt(float(dim_drug))
        b2 = 0.1 * jax.random.normal(k4, (1, dim_drug), jnp.float32)
        gamma = 1.0 + 0.1 * jax.random.normal(k5, (1, dim_drug), jnp.float32)
        beta = 0.1 * jax.random.normal(k6, (1, dim_drug), jnp.float32)
        running_mean = jnp.zeros((1, dim_drug), jnp.float32)
        running_var = jnp.ones((1, dim_drug), jnp.float32)
        bn_scale = gamma / jnp.sqrt(running_var + eps)
        bn_shift = beta - running_mean * bn_scale
        params.append((w1, b1, w2, b2, bn_scale, bn_shift))
    return params


def gnn_drug_forward(drug_feature, drug_adj, ibatch, params, num_graphs):
    """Wrapper: builds dense aggregation matrix + pooling bias (glue), runs the fused kernel."""
    n, in_dim = drug_feature.shape
    num_layers = len(params)
    dim = params[0][0].shape[1]

    # Dense aggregation matrix from edge_index [2, E]: adj[dst, src] += 1, with the GIN
    # self term (1 + eps) * x, eps = 0, folded into the diagonal. Small integer counts -> exact bf16.
    adj = jnp.zeros((n, n), jnp.float32).at[drug_adj[1], drug_adj[0]].add(1.0)
    adj_hat = (adj + jnp.eye(n, dtype=jnp.float32)).astype(jnp.bfloat16)

    # Pooling bias [G, N, 1]: 0 for member nodes, -3e38 otherwise (empty graphs -> -3e38 rows,
    # matching the masked-max reference; documented assumption).
    mask = (jnp.arange(num_graphs)[:, None] == ibatch[None, :])
    pool_bias = jnp.where(mask, jnp.float32(0.0), NEG_BIG)[:, :, None].astype(jnp.float32)

    # Lane-pad the input feature dim (75 -> 128) and layer-0 w1 rows with zeros.
    in_pad = _round_up(in_dim, LANE)
    x_pad = jnp.pad(drug_feature.astype(jnp.float32),
                    ((0, 0), (0, in_pad - in_dim))).astype(jnp.bfloat16)

    flat_params = []
    for li, (w1, b1, w2, b2, bn_s, bn_t) in enumerate(params):
        if li == 0:
            w1 = jnp.pad(w1, ((0, in_pad - in_dim), (0, 0)))
        flat_params += [w1, b1, w2, b2, bn_s, bn_t]

    out_cols = num_layers * dim
    out_pad = _round_up(out_cols, LANE)        # lane-dense output block, sliced below

    # Advisory cost estimate for XLA scheduling around the custom call.
    flops = 0
    f_in = in_pad
    for _ in range(num_layers):
        flops += 2 * n * n * f_in + 2 * n * f_in * dim + 2 * n * dim * dim
        f_in = dim
    bytes_accessed = (adj_hat.size * 2 + x_pad.size * 2 + pool_bias.size * 4
                      + sum(int(p.size) * 4 for p in flat_params)
                      + num_graphs * out_pad * 4)

    vmem_spec = pl.BlockSpec(memory_space=pltpu.MemorySpace.VMEM)
    out = pl.pallas_call(
        gnn_drug_kernel,
        out_shape=jax.ShapeDtypeStruct((num_graphs, out_pad), jnp.float32),
        in_specs=[vmem_spec] * (3 + len(flat_params)),
        out_specs=vmem_spec,
        compiler_params=pltpu.CompilerParams(vmem_limit_bytes=32 * 1024 * 1024),
        cost_estimate=pl.CostEstimate(flops=flops, transcendentals=0,
                                      bytes_accessed=bytes_accessed),
    )(adj_hat, x_pad, pool_bias, *flat_params)
    return out[:, :out_cols]


def gnn_drug_reference(drug_feature, drug_adj, ibatch, params, num_graphs,
                       agg_dtype=jnp.float32):
    """Plain-JAX reference. agg_dtype=bf16 mirrors the kernel's aggregation numerics exactly."""
    n = drug_feature.shape[0]
    adj = jnp.zeros((n, n), jnp.float32).at[drug_adj[1], drug_adj[0]].add(1.0)
    adj_hat = (adj + jnp.eye(n, dtype=jnp.float32)).astype(agg_dtype)
    mask = (jnp.arange(num_graphs)[:, None] == ibatch[None, :])
    h = drug_feature.astype(jnp.float32)
    reprs = []
    for (w1, b1, w2, b2, s, t) in params:
        agg = jnp.dot(adj_hat, h.astype(agg_dtype), preferred_element_type=jnp.float32)
        z = jnp.maximum(agg @ w1 + b1, 0.0)
        z = z @ w2 + b2
        z = jnp.maximum(z, 0.0)
        z = z * s + t
        h = z
        reprs.append(z)
    nr = jnp.concatenate(reprs, axis=1)
    rows = [jnp.max(jnp.where(mask[g][:, None], nr, NEG_BIG), axis=0) for g in range(num_graphs)]
    return jnp.stack(rows, axis=0)


if __name__ == "__main__":
    key = jax.random.PRNGKey(0)
    k_feat, k_src, k_dst, k_param = jax.random.split(key, 4)

    num_nodes = 16
    num_edges = 40
    num_graphs = 2

    drug_feature = jax.random.normal(k_feat, (num_nodes, IN_DIM), jnp.float32)
    src = jax.random.randint(k_src, (num_edges,), 0, num_nodes, dtype=jnp.int32)
    dst = jax.random.randint(k_dst, (num_edges,), 0, num_nodes, dtype=jnp.int32)
    drug_adj = jnp.stack([src, dst], axis=0)                          # edge_index [2, E]
    ibatch = jnp.concatenate([jnp.zeros((9,), jnp.int32),
                              jnp.ones((num_nodes - 9,), jnp.int32)])  # batch assignment [N]

    params = init_params(k_param)

    out = gnn_drug_forward(drug_feature, drug_adj, ibatch, params, num_graphs)
    out = jax.block_until_ready(out)
    assert out.shape == (num_graphs, LAYER_DRUG * DIM_DRUG)

    # Tight check vs. a reference that mirrors the kernel's bf16 aggregation numerics.
    ref_bf16 = gnn_drug_reference(drug_feature, drug_adj, ibatch, params, num_graphs,
                                  agg_dtype=jnp.bfloat16)
    assert jnp.allclose(out, ref_bf16, rtol=1e-3, atol=1e-3), "mismatch vs bf16-matched reference"

    # Looser sanity check vs. pure-f32 module semantics (difference = bf16 aggregation rounding).
    ref_f32 = gnn_drug_reference(drug_feature, drug_adj, ibatch, params, num_graphs,
                                 agg_dtype=jnp.float32)
    assert jnp.allclose(out, ref_f32, rtol=5e-2, atol=1e-1), "mismatch vs f32 reference"

    print("KERNEL_OK")
</pallas_src>

<mosaic_0001>
module attributes {stable_mosaic.version = 11 : i64} {
  func.func @gnn_drug_kernel(%arg0: memref<16x16xbf16, #tpu.memory_space<vmem>>, %arg1: memref<16x128xbf16, #tpu.memory_space<vmem>>, %arg2: memref<2x16x1xf32, #tpu.memory_space<vmem>>, %arg3: memref<128x32xf32, #tpu.memory_space<vmem>>, %arg4: memref<1x32xf32, #tpu.memory_space<vmem>>, %arg5: memref<32x32xf32, #tpu.memory_space<vmem>>, %arg6: memref<1x32xf32, #tpu.memory_space<vmem>>, %arg7: memref<1x32xf32, #tpu.memory_space<vmem>>, %arg8: memref<1x32xf32, #tpu.memory_space<vmem>>, %arg9: memref<32x32xf32, #tpu.memory_space<vmem>>, %arg10: memref<1x32xf32, #tpu.memory_space<vmem>>, %arg11: memref<32x32xf32, #tpu.memory_space<vmem>>, %arg12: memref<1x32xf32, #tpu.memory_space<vmem>>, %arg13: memref<1x32xf32, #tpu.memory_space<vmem>>, %arg14: memref<1x32xf32, #tpu.memory_space<vmem>>, %arg15: memref<32x32xf32, #tpu.memory_space<vmem>>, %arg16: memref<1x32xf32, #tpu.memory_space<vmem>>, %arg17: memref<32x32xf32, #tpu.memory_space<vmem>>, %arg18: memref<1x32xf32, #tpu.memory_space<vmem>>, %arg19: memref<1x32xf32, #tpu.memory_space<vmem>>, %arg20: memref<1x32xf32, #tpu.memory_space<vmem>>, %arg21: memref<2x128xf32, #tpu.memory_space<vmem>>) attributes {dimension_semantics = [], scalar_prefetch = 0 : i64, scratch_operands = 0 : i64, tpu.core_type = #tpu.core_type<tc>} {
    %c0 = arith.constant 0 : index
    %c0_0 = arith.constant 0 : index
    %0 = vector.load %arg0[%c0, %c0_0] : memref<16x16xbf16, #tpu.memory_space<vmem>>, vector<16x16xbf16>
    %c0_1 = arith.constant 0 : index
    %c0_2 = arith.constant 0 : index
    %1 = vector.load %arg1[%c0_1, %c0_2] : memref<16x128xbf16, #tpu.memory_space<vmem>>, vector<16x128xbf16>
    %c0_3 = arith.constant 0 : index
    %c0_4 = arith.constant 0 : index
    %c0_5 = arith.constant 0 : index
    %2 = vector.load %arg2[%c0_3, %c0_4, %c0_5] : memref<2x16x1xf32, #tpu.memory_space<vmem>>, vector<2x16x1xf32>
    %cst = arith.constant 0.000000e+00 : f32
    %3 = vector.broadcast %cst : f32 to vector<2x128xf32>
    %c0_6 = arith.constant 0 : index
    %c0_7 = arith.constant 0 : index
    %4 = vector.load %arg21[%c0_6, %c0_7] : memref<2x128xf32, #tpu.memory_space<vmem>>, vector<2x128xf32>
    tpu.vector_store %arg21[%c0_6, %c0_7], %3 {strides = array<i32>} : memref<2x128xf32, #tpu.memory_space<vmem>>, vector<2x128xf32>,
    %cst_8 = arith.constant dense<0.000000e+00> : vector<16x128xf32>
    %5 = tpu.matmul %0, %1, %cst_8 {dimension_numbers = #tpu.dot_dimension_numbers<[1], [0], [0], [1], [0, 0, 1, 1], [], []>} : vector<16x16xbf16>, vector<16x128xbf16>, vector<16x128xf32> -> vector<16x128xf32>
    %c0_9 = arith.constant 0 : index
    %c0_10 = arith.constant 0 : index
    %6 = vector.load %arg3[%c0_9, %c0_10] : memref<128x32xf32, #tpu.memory_space<vmem>>, vector<128x32xf32>
    %cst_11 = arith.constant dense<0.000000e+00> : vector<16x32xf32>
    %7 = tpu.matmul %5, %6, %cst_11 {dimension_numbers = #tpu.dot_dimension_numbers<[1], [0], [0], [1], [0, 0, 1, 1], [], []>} : vector<16x128xf32>, vector<128x32xf32>, vector<16x32xf32> -> vector<16x32xf32>
    %c0_12 = arith.constant 0 : index
    %c0_13 = arith.constant 0 : index
    %8 = vector.load %arg4[%c0_12, %c0_13] : memref<1x32xf32, #tpu.memory_space<vmem>>, vector<1x32xf32>
    %9 = vector.broadcast %8 : vector<1x32xf32> to vector<16x32xf32>
    %10 = arith.addf %7, %9 : vector<16x32xf32>
    %cst_14 = arith.constant 0.000000e+00 : f32
    %11 = vector.broadcast %cst_14 : f32 to vector<16x32xf32>
    %12 = arith.maximumf %10, %11 : vector<16x32xf32>
    %c0_15 = arith.constant 0 : index
    %c0_16 = arith.constant 0 : index
    %13 = vector.load %arg5[%c0_15, %c0_16] : memref<32x32xf32, #tpu.memory_space<vmem>>, vector<32x32xf32>
    %cst_17 = arith.constant dense<0.000000e+00> : vector<16x32xf32>
    %14 = tpu.matmul %12, %13, %cst_17 {dimension_numbers = #tpu.dot_dimension_numbers<[1], [0], [0], [1], [0, 0, 1, 1], [], []>} : vector<16x32xf32>, vector<32x32xf32>, vector<16x32xf32> -> vector<16x32xf32>
    %c0_18 = arith.constant 0 : index
    %c0_19 = arith.constant 0 : index
    %15 = vector.load %arg6[%c0_18, %c0_19] : memref<1x32xf32, #tpu.memory_space<vmem>>, vector<1x32xf32>
    %16 = vector.broadcast %15 : vector<1x32xf32> to vector<16x32xf32>
    %17 = arith.addf %14, %16 : vector<16x32xf32>
    %cst_20 = arith.constant 0.000000e+00 : f32
    %18 = vector.broadcast %cst_20 : f32 to vector<16x32xf32>
    %19 = arith.maximumf %17, %18 : vector<16x32xf32>
    %c0_21 = arith.constant 0 : index
    %c0_22 = arith.constant 0 : index
    %20 = vector.load %arg7[%c0_21, %c0_22] : memref<1x32xf32, #tpu.memory_space<vmem>>, vector<1x32xf32>
    %21 = vector.broadcast %20 : vector<1x32xf32> to vector<16x32xf32>
    %22 = arith.mulf %19, %21 : vector<16x32xf32>
    %c0_23 = arith.constant 0 : index
    %c0_24 = arith.constant 0 : index
    %23 = vector.load %arg8[%c0_23, %c0_24] : memref<1x32xf32, #tpu.memory_space<vmem>>, vector<1x32xf32>
    %24 = vector.broadcast %23 : vector<1x32xf32> to vector<16x32xf32>
    %25 = arith.addf %22, %24 : vector<16x32xf32>
    %26 = vector.shape_cast %25 : vector<16x32xf32> to vector<1x16x32xf32>
    %27 = vector.broadcast %26 : vector<1x16x32xf32> to vector<2x16x32xf32>
    %28 = vector.broadcast %2 : vector<2x16x1xf32> to vector<2x16x32xf32>
    %29 = arith.addf %27, %28 : vector<2x16x32xf32>
    %cst_25 = arith.constant dense<0xFF800000> : vector<2x32xf32>
    %30 = vector.multi_reduction <maximumf>, %29, %cst_25 [1] : vector<2x16x32xf32> to vector<2x32xf32>
    %c0_26 = arith.constant 0 : index
    %c0_27 = arith.constant 0 : index
    %31 = vector.load %arg21[%c0_26, %c0_27] : memref<2x128xf32, #tpu.memory_space<vmem>>, vector<2x32xf32>
    tpu.vector_store %arg21[%c0_26, %c0_27], %30 {strides = array<i32>} : memref<2x128xf32, #tpu.memory_space<vmem>>, vector<2x32xf32>,
    %32 = arith.truncf %25 : vector<16x32xf32> to vector<16x32xbf16>
    %cst_28 = arith.constant dense<0.000000e+00> : vector<16x32xf32>
    %33 = tpu.matmul %0, %32, %cst_28 {dimension_numbers = #tpu.dot_dimension_numbers<[1], [0], [0], [1], [0, 0, 1, 1], [], []>} : vector<16x16xbf16>, vector<16x32xbf16>, vector<16x32xf32> -> vector<16x32xf32>
    %c0_29 = arith.constant 0 : index
    %c0_30 = arith.constant 0 : index
    %34 = vector.load %arg9[%c0_29, %c0_30] : memref<32x32xf32, #tpu.memory_space<vmem>>, vector<32x32xf32>
    %cst_31 = arith.constant dense<0.000000e+00> : vector<16x32xf32>
    %35 = tpu.matmul %33, %34, %cst_31 {dimension_numbers = #tpu.dot_dimension_numbers<[1], [0], [0], [1], [0, 0, 1, 1], [], []>} : vector<16x32xf32>, vector<32x32xf32>, vector<16x32xf32> -> vector<16x32xf32>
    %c0_32 = arith.constant 0 : index
    %c0_33 = arith.constant 0 : index
    %36 = vector.load %arg10[%c0_32, %c0_33] : memref<1x32xf32, #tpu.memory_space<vmem>>, vector<1x32xf32>
    %37 = vector.broadcast %36 : vector<1x32xf32> to vector<16x32xf32>
    %38 = arith.addf %35, %37 : vector<16x32xf32>
    %cst_34 = arith.constant 0.000000e+00 : f32
    %39 = vector.broadcast %cst_34 : f32 to vector<16x32xf32>
    %40 = arith.maximumf %38, %39 : vector<16x32xf32>
    %c0_35 = arith.constant 0 : index
    %c0_36 = arith.constant 0 : index
    %41 = vector.load %arg11[%c0_35, %c0_36] : memref<32x32xf32, #tpu.memory_space<vmem>>, vector<32x32xf32>
    %cst_37 = arith.constant dense<0.000000e+00> : vector<16x32xf32>
    %42 = tpu.matmul %40, %41, %cst_37 {dimension_numbers = #tpu.dot_dimension_numbers<[1], [0], [0], [1], [0, 0, 1, 1], [], []>} : vector<16x32xf32>, vector<32x32xf32>, vector<16x32xf32> -> vector<16x32xf32>
    %c0_38 = arith.constant 0 : index
    %c0_39 = arith.constant 0 : index
    %43 = vector.load %arg12[%c0_38, %c0_39] : memref<1x32xf32, #tpu.memory_space<vmem>>, vector<1x32xf32>
    %44 = vector.broadcast %43 : vector<1x32xf32> to vector<16x32xf32>
    %45 = arith.addf %42, %44 : vector<16x32xf32>
    %cst_40 = arith.constant 0.000000e+00 : f32
    %46 = vector.broadcast %cst_40 : f32 to vector<16x32xf32>
    %47 = arith.maximumf %45, %46 : vector<16x32xf32>
    %c0_41 = arith.constant 0 : index
    %c0_42 = arith.constant 0 : index
    %48 = vector.load %arg13[%c0_41, %c0_42] : memref<1x32xf32, #tpu.memory_space<vmem>>, vector<1x32xf32>
    %49 = vector.broadcast %48 : vector<1x32xf32> to vector<16x32xf32>
    %50 = arith.mulf %47, %49 : vector<16x32xf32>
    %c0_43 = arith.constant 0 : index
    %c0_44 = arith.constant 0 : index
    %51 = vector.load %arg14[%c0_43, %c0_44] : memref<1x32xf32, #tpu.memory_space<vmem>>, vector<1x32xf32>
    %52 = vector.broadcast %51 : vector<1x32xf32> to vector<16x32xf32>
    %53 = arith.addf %50, %52 : vector<16x32xf32>
    %54 = vector.shape_cast %53 : vector<16x32xf32> to vector<1x16x32xf32>
    %55 = vector.broadcast %54 : vector<1x16x32xf32> to vector<2x16x32xf32>
    %56 = vector.broadcast %2 : vector<2x16x1xf32> to vector<2x16x32xf32>
    %57 = arith.addf %55, %56 : vector<2x16x32xf32>
    %cst_45 = arith.constant dense<0xFF800000> : vector<2x32xf32>
    %58 = vector.multi_reduction <maximumf>, %57, %cst_45 [1] : vector<2x16x32xf32> to vector<2x32xf32>
    %c0_46 = arith.constant 0 : index
    %c32 = arith.constant 32 : index
    %59 = vector.load %arg21[%c0_46, %c32] : memref<2x128xf32, #tpu.memory_space<vmem>>, vector<2x32xf32>
    tpu.vector_store %arg21[%c0_46, %c32], %58 {strides = array<i32>} : memref<2x128xf32, #tpu.memory_space<vmem>>, vector<2x32xf32>,
    %60 = arith.truncf %53 : vector<16x32xf32> to vector<16x32xbf16>
    %cst_47 = arith.constant dense<0.000000e+00> : vector<16x32xf32>
    %61 = tpu.matmul %0, %60, %cst_47 {dimension_numbers = #tpu.dot_dimension_numbers<[1], [0], [0], [1], [0, 0, 1, 1], [], []>} : vector<16x16xbf16>, vector<16x32xbf16>, vector<16x32xf32> -> vector<16x32xf32>
    %c0_48 = arith.constant 0 : index
    %c0_49 = arith.constant 0 : index
    %62 = vector.load %arg15[%c0_48, %c0_49] : memref<32x32xf32, #tpu.memory_space<vmem>>, vector<32x32xf32>
    %cst_50 = arith.constant dense<0.000000e+00> : vector<16x32xf32>
    %63 = tpu.matmul %61, %62, %cst_50 {dimension_numbers = #tpu.dot_dimension_numbers<[1], [0], [0], [1], [0, 0, 1, 1], [], []>} : vector<16x32xf32>, vector<32x32xf32>, vector<16x32xf32> -> vector<16x32xf32>
    %c0_51 = arith.constant 0 : index
    %c0_52 = arith.constant 0 : index
    %64 = vector.load %arg16[%c0_51, %c0_52] : memref<1x32xf32, #tpu.memory_space<vmem>>, vector<1x32xf32>
    %65 = vector.broadcast %64 : vector<1x32xf32> to vector<16x32xf32>
    %66 = arith.addf %63, %65 : vector<16x32xf32>
    %cst_53 = arith.constant 0.000000e+00 : f32
    %67 = vector.broadcast %cst_53 : f32 to vector<16x32xf32>
    %68 = arith.maximumf %66, %67 : vector<16x32xf32>
    %c0_54 = arith.constant 0 : index
    %c0_55 = arith.constant 0 : index
    %69 = vector.load %arg17[%c0_54, %c0_55] : memref<32x32xf32, #tpu.memory_space<vmem>>, vector<32x32xf32>
    %cst_56 = arith.constant dense<0.000000e+00> : vector<16x32xf32>
    %70 = tpu.matmul %68, %69, %cst_56 {dimension_numbers = #tpu.dot_dimension_numbers<[1], [0], [0], [1], [0, 0, 1, 1], [], []>} : vector<16x32xf32>, vector<32x32xf32>, vector<16x32xf32> -> vector<16x32xf32>
    %c0_57 = arith.constant 0 : index
    %c0_58 = arith.constant 0 : index
    %71 = vector.load %arg18[%c0_57, %c0_58] : memref<1x32xf32, #tpu.memory_space<vmem>>, vector<1x32xf32>
    %72 = vector.broadcast %71 : vector<1x32xf32> to vector<16x32xf32>
    %73 = arith.addf %70, %72 : vector<16x32xf32>
    %cst_59 = arith.constant 0.000000e+00 : f32
    %74 = vector.broadcast %cst_59 : f32 to vector<16x32xf32>
    %75 = arith.maximumf %73, %74 : vector<16x32xf32>
    %c0_60 = arith.constant 0 : index
    %c0_61 = arith.constant 0 : index
    %76 = vector.load %arg19[%c0_60, %c0_61] : memref<1x32xf32, #tpu.memory_space<vmem>>, vector<1x32xf32>
    %77 = vector.broadcast %76 : vector<1x32xf32> to vector<16x32xf32>
    %78 = arith.mulf %75, %77 : vector<16x32xf32>
    %c0_62 = arith.constant 0 : index
    %c0_63 = arith.constant 0 : index
    %79 = vector.load %arg20[%c0_62, %c0_63] : memref<1x32xf32, #tpu.memory_space<vmem>>, vector<1x32xf32>
    %80 = vector.broadcast %79 : vector<1x32xf32> to vector<16x32xf32>
    %81 = arith.addf %78, %80 : vector<16x32xf32>
    %82 = vector.shape_cast %81 : vector<16x32xf32> to vector<1x16x32xf32>
    %83 = vector.broadcast %82 : vector<1x16x32xf32> to vector<2x16x32xf32>
    %84 = vector.broadcast %2 : vector<2x16x1xf32> to vector<2x16x32xf32>
    %85 = arith.addf %83, %84 : vector<2x16x32xf32>
    %cst_64 = arith.constant dense<0xFF800000> : vector<2x32xf32>
    %86 = vector.multi_reduction <maximumf>, %85, %cst_64 [1] : vector<2x16x32xf32> to vector<2x32xf32>
    %c0_65 = arith.constant 0 : index
    %c64 = arith.constant 64 : index
    %87 = vector.load %arg21[%c0_65, %c64] : memref<2x128xf32, #tpu.memory_space<vmem>>, vector<2x32xf32>
    tpu.vector_store %arg21[%c0_65, %c64], %86 {strides = array<i32>} : memref<2x128xf32, #tpu.memory_space<vmem>>, vector<2x32xf32>,
    return
  }
}

</mosaic_0001>

<bundles_post_ra>
// kernel: tpu_custom_call.1
= control target key start
LH: loop header
LB: loop body
LE: loop exit
PB: predicated region body
PF: predicated region fallthrough
CT: control target
= control target key end

     0   :  { %s1617_s0 = inlined_call_operand.hbm [shape: bf16[16,16], index: 0, kind: input, shape index: {}]   ;;  %s1618_s1 = inlined_call_operand.hbm [shape: bf16[16,128], index: 1, kind: input, shape index: {}]   ;;  %s1619_s2 = inlined_call_operand.vmem [shape: f32[2,16,1], index: 2, kind: input, shape index: {}]   ;;  %s1620_s3 = inlined_call_operand.vmem [shape: f32[128,32], index: 3, kind: input, shape index: {}]   ;;  %s1621_s4 = inlined_call_operand.vmem [shape: f32[1,32], index: 4, kind: input, shape index: {}]   ;;  %s1622_s5 = inlined_call_operand.vmem [shape: f32[32,32], index: 5, kind: input, shape index: {}]   ;;  %s1623_s6 = inlined_call_operand.vmem [shape: f32[1,32], index: 6, kind: input, shape index: {}]   ;;  %s1624_s7 = inlined_call_operand.vmem [shape: f32[1,32], index: 7, kind: input, shape index: {}]   ;;  %s1625_s8 = inlined_call_operand.vmem [shape: f32[1,32], index: 8, kind: input, shape index: {}]   ;;  %s1626_s9 = inlined_call_operand.vmem [shape: f32[32,32], index: 9, kind: input, shape index: {}]   ;;  %s1627_s10 = inlined_call_operand.vmem [shape: f32[1,32], index: 10, kind: input, shape index: {}]   ;;  %s1628_s11 = inlined_call_operand.vmem [shape: f32[32,32], index: 11, kind: input, shape index: {}]   ;;  %s1629_s12 = inlined_call_operand.vmem [shape: f32[1,32], index: 12, kind: input, shape index: {}]   ;;  %s1630_s13 = inlined_call_operand.vmem [shape: f32[1,32], index: 13, kind: input, shape index: {}]   ;;  %s1631_s14 = inlined_call_operand.vmem [shape: f32[1,32], index: 14, kind: input, shape index: {}]   ;;  %s1632_s15 = inlined_call_operand.vmem [shape: f32[32,32], index: 15, kind: input, shape index: {}]   ;;  %s1633_s16 = inlined_call_operand.vmem [shape: f32[1,32], index: 16, kind: input, shape index: {}]   ;;  %s1634_s17 = inlined_call_operand.vmem [shape: f32[32,32], index: 17, kind: input, shape index: {}]   ;;  %s1635_s18 = inlined_call_operand.vmem [shape: f32[1,32], index: 18, kind: input, shape index: {}]   ;;  %s1636_s19 = inlined_call_operand.vmem [shape: f32[1,32], index: 19, kind: input, shape index: {}]   ;;  %s1637_s20 = inlined_call_operand.vmem [shape: f32[1,32], index: 20, kind: input, shape index: {}]   ;;  %s1638_s21 = inlined_call_operand.hbm [shape: f32[2,128], index: 21, kind: output, shape index: {}]  }
   0x1   :  { %1642 = sst [smem:[#allocation11_spill]] %s1617_s0 }
   0x2   :  { %1643 = sst [smem:[#allocation12_spill]] %s1618_s1 }
   0x3   :  { %1644 = sst [smem:[#allocation13_spill]] %s1619_s2 }
   0x4   :  { %1645 = sst [smem:[#allocation14_spill]] %s1620_s3 }
   0x5   :  { %1646 = sst [smem:[#allocation15_spill]] %s1621_s4 }
   0x6   :  { %1647 = sst [smem:[#allocation16_spill]] %s1622_s5 }
   0x7   :  { %26 = vsyncpa [#allocation3], 0 }
   0x8   :  { %27 = vsyncpa [#allocation6], 0 }
   0x9   :  { %28 = vsyncpa [#allocation4], 0  ;;  %s1265_s2 = smov [#allocation2]  }
   0xa   :  { %s34_s25 = sshll.u32 %s1265_s2, 4  ;;  %s35_s25 = int_to_ptr.vmem [resolvable:$true] %s34_s25 }
   0xb   :  { %s1207_s26 = scalar_lea.vmem %s35_s25, 128  ;;  %p1212_p1 = scmp.lt.s32.totalorder %s35_s25, %s35_s25 }
   0xc   :  { %p1208_p0 = scmp.ne.s32.totalorder %s35_s25, %s1207_s26  ;;  %p1213_p2 = scmp.lt.s32.totalorder %s1207_s26, %s1207_s26 }
   0xe   :  { %p1214_p3 = por %p1213_p2, %p1212_p1 }
  0x10   :  { %p1215_p4 = pnand %p1214_p3, %p1208_p0 }
  0x12   :  { %1218 = shalt.err (!%p1215_p4)
}
  0x13   :  { %s1266_s27 = smov 64   ;;  %s1267_s3 = smov 4  }
  0x14   :  { %s1648_s0 = sld [smem:[#allocation11_spill]]  ;;  %s1268_s4 = smov [#allocation5]  }
  0x15   :  { %s46_s30 = sshll.u32 %s1268_s4, 4  ;;  %s47_s30 = int_to_ptr.vmem [resolvable:$true] %s46_s30 }
  0x16   :  { %s1227_s5 = scalar_lea.vmem %s47_s30, 128  ;;  %p1232_p6 = scmp.lt.s32.totalorder %s47_s30, %s47_s30 }
  0x17   :  { %p1228_p5 = scmp.ne.s32.totalorder %s47_s30, %s1227_s5  ;;  %p1233_p7 = scmp.lt.s32.totalorder %s1227_s5, %s1227_s5 }
  0x19   :  { %p1234_p8 = por %p1233_p7, %p1232_p6 }
  0x1a   :  { %40 = dma.hbm_to_vmem [thread:$0]  %s1648_s0, 128, %s35_s25, [#allocation3], %s1266_s27, %s1266_s27, %s1267_s3  }
  0x1b   :  { %p1235_p9 = pnand %p1234_p8, %p1228_p5 }
  0x1d   :  { %1238 = shalt.err (!%p1235_p9)
}
  0x1e   :  { %s1649_s1 = sld [smem:[#allocation12_spill]] }
  0x24   :  { %52 = dma.hbm_to_vmem [thread:$0]  %s1649_s1, 128, %s47_s30, [#allocation6], %s1266_s27, %s1266_s27, %s1267_s3  }
  0x25   :  { %1259 = dma.done.wait [#allocation3], 128  }
  0x26   :  { %1260 = vsyncadd [#allocation3], 4294967168 }
  0x27   :  { %1261 = dma.done.wait [#allocation6], 128  }
  0x28   :  { %1262 = vsyncadd [#allocation6], 4294967168  ;;  %v1269_v0 = vmov 0.0   ;;  %vm1270_vm0 = vmmov 0   ;;  %v1197_v1 = vld [vmem:[#allocation5] sm:$0xff]   ;;  %v1398_v2 = vld [vmem:[#allocation2] sm:$0xff]  }
  0x29   :  { %1078 = vmatprep.subr.bf16.mxu0 %v1269_v0  ;;  %106 = vst [vmem:[#allocation7] sm:$0x3] %v1269_v0  ;;  %1080 = vmatprep.mubr.msk.bf16.mxu0 %vm1270_vm0, %v1269_v0  ;;  %vm118_vm1 = vcmask 130048   ;;  %s1650_s25 = sld [smem:[#allocation14_spill]]  ;;  %v1271_v29 = vmov 0   ;;  %vm274_vm2 = vcmask 261120  }
  0x2a   :  { %1079 = vmatpush3.bf16.msra.mxu0 %v1197_v1  ;;  %s1651_s30 = sld [smem:[#allocation16_spill]]  ;;  %1196 = vset.pattern.permute.xlu1 %v1271_v29  ;;  %v1001_v39 = vld [vmem:[%s1623_s6] ss:$0 sm:$0xff]  ;;  %v470_v61 = vld [vmem:[%s1626_s9 + $0x18] sm:$0xff]  ;;  %vm420_vm3 = vcmask 1041409   ;;  %vm423_vm4 = vcmask 254976  }
  0x2b   :  { %s1652_s3 = sld [smem:[#allocation13_spill]]  ;;  %1195 = vset.pattern.permute.xlu0 %v1271_v29  ;;  %v1004_v44 = vld [vmem:[%s1624_s7] ss:$0 sm:$0xff]  ;;  %s1272_s4 = smov 32   ;;  %vm701_vm5 = vcmask 517376   ;;  %vm979_vm6 = vcmask 779776  }
  0x2c   :  { %s1653_s23 = sld [smem:[#allocation15_spill]]  ;;  %v1005_v48 = vld [vmem:[%s1625_s8] ss:$0 sm:$0xff] }
  0x2d   :  { %1081 = vmatmul.mubr.msk.bf16.vlgmr.msra.gmra.mxu0 %vm118_vm1, %v1398_v2  ;;  %v561_v29 = vld [vmem:[%s1628_s11] sm:$0xff] }
  0x2f   :  { %v178_v3 = vld [vmem:[%s1650_s25 + $0x78] sm:$0xff]  ;;  %v177_v4 = vld [vmem:[%s1650_s25 + $0x70] sm:$0xff]  ;;  %v176_v5 = vld [vmem:[%s1650_s25 + $0x68] sm:$0xff] }
  0x30   :  { %1084 = vmatprep.subr.mxu1 %v178_v3  ;;  %v175_v6 = vld [vmem:[%s1650_s25 + $0x60] sm:$0xff]  ;;  %v174_v7 = vld [vmem:[%s1650_s25 + $0x58] sm:$0xff]  ;;  %v173_v8 = vld [vmem:[%s1650_s25 + $0x50] sm:$0xff] }
  0x31   :  { %1085 = vmatpush3.msra.mxu1 %v178_v3  ;;  %v172_v9 = vld [vmem:[%s1650_s25 + $0x48] sm:$0xff]  ;;  %v171_v10 = vld [vmem:[%s1650_s25 + $0x40] sm:$0xff]  ;;  %v170_v11 = vld [vmem:[%s1650_s25 + $0x38] sm:$0xff] }
  0x32   :  { %1086 = vmatprep.subr.mxu1 %v177_v4  ;;  %v169_v12 = vld [vmem:[%s1650_s25 + $0x30] sm:$0xff]  ;;  %v168_v13 = vld [vmem:[%s1650_s25 + $0x28] sm:$0xff]  ;;  %v167_v14 = vld [vmem:[%s1650_s25 + $0x20] sm:$0xff] }
  0x33   :  { %1087 = vmatpush3.msra.mxu1 %v177_v4  ;;  %v166_v15 = vld [vmem:[%s1650_s25 + $0x18] sm:$0xff]  ;;  %v165_v16 = vld [vmem:[%s1650_s25 + $0x10] sm:$0xff]  ;;  %v164_v17 = vld [vmem:[%s1650_s25 + $0x8] sm:$0xff] }
  0x34   :  { %1088 = vmatprep.subr.mxu1 %v176_v5  ;;  %v163_v18 = vld [vmem:[%s1650_s25] sm:$0xff]  ;;  %v266_v23 = vld [vmem:[%s1651_s30 + $0x18] sm:$0xff]  ;;  %v265_v24 = vld [vmem:[%s1651_s30 + $0x10] sm:$0xff] }
  0x35   :  { %1089 = vmatpush3.msra.mxu1 %v176_v5  ;;  %1119 = vmatprep.subr.mxu0 %v266_v23  ;;  %v264_v25 = vld [vmem:[%s1651_s30 + $0x8] sm:$0xff]  ;;  %v263_v26 = vld [vmem:[%s1651_s30] sm:$0xff]  ;;  %v104_v27 = vld [vmem:[%s1652_s3 + $0x10] sm:$0xff] }
  0x36   :  { %1090 = vmatprep.subr.mxu1 %v175_v6  ;;  %1120 = vmatpush3.msra.mxu0 %v266_v23  ;;  %v102_v28 = vld [vmem:[%s1652_s3] sm:$0xff]  ;;  %v105_v30 = vld [vmem:[%s1652_s3 + $0x18] sm:$0xff]  ;;  %v103_v31 = vld [vmem:[%s1652_s3 + $0x8] sm:$0xff] }
  0x37   :  { %1091 = vmatpush3.msra.mxu1 %v175_v6  ;;  %1121 = vmatprep.subr.mxu0 %v265_v24  ;;  %v1000_v32 = vld [vmem:[%s1653_s23] ss:$0 sm:$0xff] }
  0x38   :  { %1092 = vmatprep.subr.mxu1 %v174_v7  ;;  %1122 = vmatpush3.msra.mxu0 %v265_v24 }
  0x39   :  { %1093 = vmatpush3.msra.mxu1 %v174_v7  ;;  %1123 = vmatprep.subr.mxu0 %v264_v25 }
  0x3a   :  { %1094 = vmatprep.subr.mxu1 %v173_v8  ;;  %1124 = vmatpush3.msra.mxu0 %v264_v25 }
  0x3b   :  { %1095 = vmatpush3.msra.mxu1 %v173_v8  ;;  %1125 = vmatprep.subr.mxu0 %v263_v26  ;;  %v469_v8 = vld [vmem:[%s1626_s9 + $0x10] sm:$0xff] }
  0x3c   :  { %1096 = vmatprep.subr.mxu1 %v172_v9  ;;  %1126 = vmatpush3.msra.mxu0 %v263_v26  ;;  %v564_v26 = vld [vmem:[%s1628_s11 + $0x18] sm:$0xff] }
  0x3d   :  { %1097 = vmatpush3.msra.mxu1 %v172_v9  ;;  %1130 = vmatprep.subr.bf16.mxu0 %v1269_v0 }
  0x3e   :  { %1098 = vmatprep.subr.mxu1 %v171_v10  ;;  %388 = vperm.xlu1 %1196, %v104_v27   ;;  %v563_v27 = vld [vmem:[%s1628_s11 + $0x10] sm:$0xff] }
  0x3f   :  { %1099 = vmatpush3.msra.mxu1 %v171_v10  ;;  %378 = vperm.xlu0 %1195, %v102_v28   ;;  %v562_v28 = vld [vmem:[%s1628_s11 + $0x8] sm:$0xff] }
  0x40   :  { %1100 = vmatprep.subr.mxu1 %v170_v11 }
  0x41   :  { %1101 = vmatpush3.msra.mxu1 %v170_v11 }
  0x42   :  { %1102 = vmatprep.subr.mxu1 %v169_v12  ;;  %393 = vperm.xlu1 %1196, %v105_v30   ;;  %v1007_v30 = vld [vmem:[%s1627_s10] ss:$0 sm:$0xff] }
  0x43   :  { %1103 = vmatpush3.msra.mxu1 %v169_v12  ;;  %383 = vperm.xlu0 %1195, %v103_v31  }
  0x44   :  { %1104 = vmatprep.subr.mxu1 %v168_v13 }
  0x45   :  { %1105 = vmatpush3.msra.mxu1 %v168_v13 }
  0x46   :  { %1106 = vmatprep.subr.mxu1 %v167_v14 }
  0x47   :  { %1107 = vmatpush3.msra.mxu1 %v167_v14 }
  0x48   :  { %1108 = vmatprep.subr.mxu1 %v166_v15 }
  0x49   :  { %1109 = vmatpush3.msra.mxu1 %v166_v15 }
  0x4a   :  { %1110 = vmatprep.subr.mxu1 %v165_v16 }
  0x4b   :  { %1111 = vmatpush3.msra.mxu1 %v165_v16 }
  0x4c   :  { %1112 = vmatprep.subr.mxu1 %v164_v17 }
  0x4d   :  { %1113 = vmatpush3.msra.mxu1 %v164_v17 }
  0x4e   :  { %1114 = vmatprep.subr.mxu1 %v163_v18 }
  0x4f   :  { %1115 = vmatpush3.msra.mxu1 %v163_v18 }
  0xb9   :  { %v1485_v40 = vpop.permute.xlu1 %388 }
  0xba   :  { %v1487_v42 = vpop.permute.xlu0 %378 }
  0xbd   :  { %v1495_v51 = vpop.permute.xlu1 %393 }
  0xbe   :  { %v1497_v52 = vpop.permute.xlu0 %383 }
  0xed   :  { %v156_v19 = vpop.f32.mrf.mxu0 }
  0xee   :  { %1116 = vmatprep.mubr.f32.mxu1 %v156_v19 }
  0xef   :  { %v1082_v20 = vpop.f32.mrf.mxu0 }
  0xf0   :  { %v468_v20 = vld [vmem:[%s1626_s9 + $0x8] sm:$0xff] }
  0xf1   :  { %v159_v21 = vpop.f32.mrf.mxu0 }
  0xf2   :  { %1117 = vmatmul.mubr.f32.vlgmr.msra.gmra.mxu1 %v159_v21  ;;  %v467_v21 = vld [vmem:[%s1626_s9] sm:$0xff] }
  0xf3   :  { %v1083_v22 = vpop.f32.mrf.mxu0 }
 0x1b2   :  { %v1118_v33 = vpop.f32.mrf.mxu1 }
 0x1b3   :  { %v258_v34 = vadd.f32 %v1118_v33, %v1000_v32 }
 0x1b4   :  { %v252_v35 = vpop.f32.mrf.mxu1 }
 0x1b5   :  { %v253_v36 = vadd.f32 %v1000_v32, %v252_v35  ;;  %v262_v38 = vmax.f32 %v258_v34, 0.0 }
 0x1b7   :  { %v261_v37 = vmax.f32 %v253_v36, 0.0 }
 0x1b9   :  { %1127 = vmatprep.mubr.msk.f32.mxu0 %vm274_vm2, %v261_v37  ;;  %v1010_v37 = vld [vmem:[%s1629_s12] ss:$0 sm:$0xff] }
 0x1ba   :  { %1128 = vmatmul.mubr.msk.f32.vlgmr.msra.gmra.mxu0 %vm274_vm2, %v262_v38 }
 0x1bb   :  { %1132 = vmatprep.mubr.msk.bf16.mxu0 %vm1270_vm0, %v1269_v0 }
 0x27a   :  { %v1129_v41 = vpop.f32.mrf.mxu0 }
 0x27b   :  { %v353_v43 = vadd.f32 %v1129_v41, %v1001_v39  ;;  %v1013_v41 = vld [vmem:[%s1630_s13] ss:$0 sm:$0xff] }
 0x27c   :  { %v347_v45 = vpop.f32.mrf.mxu0 }
 0x27d   :  { %v357_v46 = vmax.f32 %v353_v43, 0.0  ;;  %v348_v47 = vadd.f32 %v1001_v39, %v347_v45 }
 0x27f   :  { %v366_v49 = vmul.f32 %v1004_v44, %v357_v46  ;;  %v356_v50 = vmax.f32 %v348_v47, 0.0  ;;  %v1014_v46 = vld [vmem:[%s1631_s14] ss:$0 sm:$0xff] }
 0x281   :  { %v375_v53 = vadd.f32 %v1005_v48, %v366_v49  ;;  %v365_v54 = vmul.f32 %v1004_v44, %v356_v50 }
 0x283   :  { %v374_v55 = vadd.f32 %v1005_v48, %v365_v54  ;;  %v399_v56 = vadd.f32 %v1495_v51, %v375_v53  ;;  %v397_v57 = vadd.f32 %v1497_v52, %v375_v53 }
 0x285   :  { %v398_v58 = vadd.f32 %v1485_v40, %v374_v55  ;;  %v396_v59 = vadd.f32 %v1487_v42, %v374_v55  ;;  %v425_v60 = vpack.c.bf16 %v375_v53, %v374_v55  ;;  %v410_v1 = vsel %vm274_vm2, %v399_v56, -inf }
 0x286   :  { %v401_v3 = vsel %vm274_vm2, %v397_v57, -inf }
 0x287   :  { %v409_v62 = vsel %vm274_vm2, %v398_v58, -inf  ;;  %v400_v63 = vsel %vm274_vm2, %v396_v59, -inf  ;;  %1131 = vmatpush3.bf16.msra.mxu0 %v425_v60 }
 0x288   :  { %v411_v4 = vmax.f32 %v409_v62, %v410_v1  ;;  %v402_v5 = vmax.f32 %v400_v63, %v401_v3  ;;  %1136 = vmatprep.subr.mxu0 %v470_v61 }
 0x28a   :  { %v412_v6 = vrot.slane %v411_v4, 4  ;;  %v403_v7 = vrot.slane %v402_v5, 4  ;;  %1133 = vmatmul.mubr.msk.bf16.vlgmr.msra.gmra.mxu0 %vm118_vm1, %v1398_v2 }
 0x28b   :  { %1137 = vmatpush3.msra.mxu0 %v470_v61 }
 0x28c   :  { %v413_v9 = vmax.f32 %v411_v4, %v412_v6  ;;  %v404_v10 = vmax.f32 %v402_v5, %v403_v7  ;;  %1138 = vmatprep.subr.mxu0 %v469_v8  ;;  %v748_v4 = vld [vmem:[%s1632_s15 + $0x18] sm:$0xff]  ;;  %v747_v5 = vld [vmem:[%s1632_s15 + $0x10] sm:$0xff] }
 0x28d   :  { %1139 = vmatpush3.msra.mxu0 %v469_v8  ;;  %1164 = vmatprep.subr.mxu1 %v748_v4 }
 0x28e   :  { %v414_v11 = vrot.slane %v413_v9, 2  ;;  %v405_v12 = vrot.slane %v404_v10, 2  ;;  %1140 = vmatprep.subr.mxu0 %v468_v20  ;;  %1165 = vmatpush3.msra.mxu1 %v748_v4 }
 0x28f   :  { %1141 = vmatpush3.msra.mxu0 %v468_v20  ;;  %1166 = vmatprep.subr.mxu1 %v747_v5 }
 0x290   :  { %v415_v13 = vmax.f32 %v413_v9, %v414_v11  ;;  %v406_v14 = vmax.f32 %v404_v10, %v405_v12  ;;  %1142 = vmatprep.subr.mxu0 %v467_v21  ;;  %1167 = vmatpush3.msra.mxu1 %v747_v5 }
 0x291   :  { %1143 = vmatpush3.msra.mxu0 %v467_v21 }
 0x292   :  { %v416_v15 = vrot.slane %v415_v13, 1  ;;  %v407_v16 = vrot.slane %v406_v14, 1  ;;  %1147 = vmatprep.subr.mxu0 %v564_v26 }
 0x294   :  { %v408_v17 = vmax.f32 %v406_v14, %v407_v16  ;;  %v417_v18 = vmax.f32 %v415_v13, %v416_v15 }
 0x296   :  { %v421_v19 = vsel %vm420_vm3, %v417_v18, %v408_v17  ;;  %v745_v17 = vld [vmem:[%s1632_s15] sm:$0xff] }
 0x297   :  { %424 = vst.msk [vmem:[#allocation7] sm:$0x3] %vm423_vm4, %v421_v19 }
 0x34a   :  { %v460_v22 = vpop.f32.mrf.mxu0 }
 0x34b   :  { %1144 = vmatprep.mubr.msk.f32.mxu0 %vm274_vm2, %v460_v22 }
 0x34c   :  { %v1134_v23 = vpop.f32.mrf.mxu0 }
 0x34d   :  { %v842_v23 = vld [vmem:[%s1634_s17 + $0x18] sm:$0xff] }
 0x34e   :  { %v463_v24 = vpop.f32.mrf.mxu0 }
 0x34f   :  { %1145 = vmatmul.mubr.msk.f32.vlgmr.msra.gmra.mxu0 %vm274_vm2, %v463_v24  ;;  %v841_v24 = vld [vmem:[%s1634_s17 + $0x10] sm:$0xff] }
 0x350   :  { %v1135_v25 = vpop.f32.mrf.mxu0  ;;  %1148 = vmatpush3.msra.mxu0 %v564_v26  ;;  %v839_v26 = vld [vmem:[%s1634_s17] sm:$0xff] }
 0x351   :  { %1149 = vmatprep.subr.mxu0 %v563_v27  ;;  %v840_v25 = vld [vmem:[%s1634_s17 + $0x8] sm:$0xff] }
 0x352   :  { %1150 = vmatpush3.msra.mxu0 %v563_v27  ;;  %v1016_v27 = vld [vmem:[%s1633_s16] ss:$0 sm:$0xff] }
 0x353   :  { %1151 = vmatprep.subr.mxu0 %v562_v28 }
 0x354   :  { %1152 = vmatpush3.msra.mxu0 %v562_v28 }
 0x355   :  { %1153 = vmatprep.subr.mxu0 %v561_v29 }
 0x356   :  { %1154 = vmatpush3.msra.mxu0 %v561_v29 }
 0x357   :  { %1158 = vmatprep.subr.bf16.mxu0 %v1269_v0 }
 0x40f   :  { %v1146_v31 = vpop.f32.mrf.mxu0 }
 0x410   :  { %v556_v32 = vadd.f32 %v1146_v31, %v1007_v30 }
 0x411   :  { %v550_v33 = vpop.f32.mrf.mxu0 }
 0x412   :  { %v551_v34 = vadd.f32 %v1007_v30, %v550_v33  ;;  %v560_v36 = vmax.f32 %v556_v32, 0.0 }
 0x414   :  { %v559_v35 = vmax.f32 %v551_v34, 0.0  ;;  %v1019_v34 = vld [vmem:[%s1635_s18] ss:$0 sm:$0xff]  ;;  %s1273_s18 = smov [#allocation7]  }
 0x416   :  { %1155 = vmatprep.mubr.msk.f32.mxu0 %vm274_vm2, %v559_v35 }
 0x417   :  { %1156 = vmatmul.mubr.msk.f32.vlgmr.msra.gmra.mxu0 %vm274_vm2, %v560_v36 }
 0x418   :  { %1160 = vmatprep.mubr.msk.bf16.mxu0 %vm1270_vm0, %v1269_v0 }
 0x4d7   :  { %v1157_v38 = vpop.f32.mrf.mxu0 }
 0x4d8   :  { %v650_v39 = vadd.f32 %v1157_v38, %v1010_v37 }
 0x4d9   :  { %v644_v43 = vpop.f32.mrf.mxu0 }
 0x4da   :  { %v654_v44 = vmax.f32 %v650_v39, 0.0  ;;  %v645_v45 = vadd.f32 %v1010_v37, %v644_v43  ;;  %v1022_v37 = vld [vmem:[%s1636_s19] ss:$0 sm:$0xff]  ;;  %s987_s19 = sshll.u32 %s1273_s18, 4  ;;  %s988_s19 = int_to_ptr.vmem [resolvable:$true] %s987_s19 }
 0x4db   :  { %v1023_v43 = vld [vmem:[%s1637_s20] ss:$0 sm:$0xff]  ;;  %s1239_s20 = scalar_lea.vmem %s988_s19, 32  ;;  %p1244_p11 = scmp.lt.s32.totalorder %s988_s19, %s988_s19 }
 0x4dc   :  { %v663_v47 = vmul.f32 %v1013_v41, %v654_v44  ;;  %v653_v48 = vmax.f32 %v645_v45, 0.0  ;;  %p1240_p10 = scmp.ne.s32.totalorder %s988_s19, %s1239_s20  ;;  %p1245_p12 = scmp.lt.s32.totalorder %s1239_s20, %s1239_s20 }
 0x4de   :  { %v672_v0 = vadd.f32 %v1014_v46, %v663_v47  ;;  %v662_v49 = vmul.f32 %v1013_v41, %v653_v48  ;;  %p1246_p13 = por %p1245_p12, %p1244_p11 }
 0x4e0   :  { %v674_v50 = vadd.f32 %v672_v0, %v1497_v52  ;;  %v676_v53 = vadd.f32 %v672_v0, %v1495_v51  ;;  %v671_v54 = vadd.f32 %v1014_v46, %v662_v49  ;;  %p1247_p0 = pnand %p1246_p13, %p1240_p10 }
 0x4e2   :  { %v673_v55 = vadd.f32 %v671_v54, %v1487_v42  ;;  %v675_v56 = vadd.f32 %v671_v54, %v1485_v40  ;;  %v703_v57 = vpack.c.bf16 %v672_v0, %v671_v54  ;;  %v678_v58 = vsel %vm274_vm2, %v674_v50, -inf }
 0x4e3   :  { %v687_v59 = vsel %vm274_vm2, %v676_v53, -inf }
 0x4e4   :  { %v677_v60 = vsel %vm274_vm2, %v673_v55, -inf  ;;  %v686_v61 = vsel %vm274_vm2, %v675_v56, -inf  ;;  %1159 = vmatpush3.bf16.msra.mxu0 %v703_v57 }
 0x4e5   :  { %v679_v62 = vmax.f32 %v677_v60, %v678_v58  ;;  %v688_v63 = vmax.f32 %v686_v61, %v687_v59  ;;  %1175 = vmatprep.subr.mxu0 %v842_v23 }
 0x4e7   :  { %v680_v1 = vrot.slane %v679_v62, 4  ;;  %v689_v3 = vrot.slane %v688_v63, 4  ;;  %1161 = vmatmul.mubr.msk.bf16.vlgmr.msra.gmra.mxu0 %vm118_vm1, %v1398_v2  ;;  %v746_v2 = vld [vmem:[%s1632_s15 + $0x8] sm:$0xff] }
 0x4e8   :  { %1168 = vmatprep.subr.mxu1 %v746_v2  ;;  %1176 = vmatpush3.msra.mxu0 %v842_v23 }
 0x4e9   :  { %v681_v6 = vmax.f32 %v679_v62, %v680_v1  ;;  %v690_v7 = vmax.f32 %v688_v63, %v689_v3  ;;  %1169 = vmatpush3.msra.mxu1 %v746_v2  ;;  %1177 = vmatprep.subr.mxu0 %v841_v24 }
 0x4ea   :  { %1170 = vmatprep.subr.mxu1 %v745_v17  ;;  %1178 = vmatpush3.msra.mxu0 %v841_v24 }
 0x4eb   :  { %v682_v8 = vrot.slane %v681_v6, 2  ;;  %v691_v9 = vrot.slane %v690_v7, 2  ;;  %1171 = vmatpush3.msra.mxu1 %v745_v17  ;;  %1179 = vmatprep.subr.mxu0 %v840_v25 }
 0x4ec   :  { %1180 = vmatpush3.msra.mxu0 %v840_v25 }
 0x4ed   :  { %v683_v10 = vmax.f32 %v681_v6, %v682_v8  ;;  %v692_v11 = vmax.f32 %v690_v7, %v691_v9  ;;  %1181 = vmatprep.subr.mxu0 %v839_v26 }
 0x4ee   :  { %1182 = vmatpush3.msra.mxu0 %v839_v26 }
 0x4ef   :  { %v684_v12 = vrot.slane %v683_v10, 1  ;;  %v693_v13 = vrot.slane %v692_v11, 1 }
 0x4f1   :  { %v685_v14 = vmax.f32 %v683_v10, %v684_v12  ;;  %v694_v15 = vmax.f32 %v692_v11, %v693_v13 }
 0x4f3   :  { %v697_v16 = vsel %vm420_vm3, %v694_v15, %v685_v14 }
 0x4f4   :  { %698 = vrot.lane.b32.xlu0 %v697_v16, %s1272_s4 }
 0x566   :  { %v699_v18 = vpop.permute.xlu0 %698 }
 0x567   :  { %702 = vst.msk [vmem:[#allocation7] sm:$0x3] %vm701_vm5, %v699_v18 }
 0x5a7   :  { %v738_v19 = vpop.f32.mrf.mxu0 }
 0x5a8   :  { %1172 = vmatprep.mubr.msk.f32.mxu1 %vm274_vm2, %v738_v19 }
 0x5a9   :  { %v1162_v20 = vpop.f32.mrf.mxu0 }
 0x5ab   :  { %v741_v21 = vpop.f32.mrf.mxu0 }
 0x5ac   :  { %1173 = vmatmul.mubr.msk.f32.vlgmr.msra.gmra.mxu1 %vm274_vm2, %v741_v21 }
 0x5ad   :  { %v1163_v22 = vpop.f32.mrf.mxu0 }
 0x66c   :  { %v1174_v28 = vpop.f32.mrf.mxu1 }
 0x66d   :  { %v834_v29 = vadd.f32 %v1174_v28, %v1016_v27 }
 0x66e   :  { %v828_v30 = vpop.f32.mrf.mxu1 }
 0x66f   :  { %v829_v31 = vadd.f32 %v1016_v27, %v828_v30  ;;  %v838_v33 = vmax.f32 %v834_v29, 0.0 }
 0x671   :  { %v837_v32 = vmax.f32 %v829_v31, 0.0 }
 0x673   :  { %1183 = vmatprep.mubr.msk.f32.mxu0 %vm274_vm2, %v837_v32 }
 0x674   :  { %1184 = vmatmul.mubr.msk.f32.vlgmr.msra.gmra.mxu0 %vm274_vm2, %v838_v33 }
 0x734   :  { %v1185_v35 = vpop.f32.mrf.mxu0 }
 0x735   :  { %v928_v36 = vadd.f32 %v1185_v35, %v1019_v34 }
 0x736   :  { %v922_v38 = vpop.f32.mrf.mxu0 }
 0x737   :  { %v932_v39 = vmax.f32 %v928_v36, 0.0  ;;  %v923_v41 = vadd.f32 %v1019_v34, %v922_v38 }
 0x739   :  { %v941_v44 = vmul.f32 %v1022_v37, %v932_v39  ;;  %v931_v45 = vmax.f32 %v923_v41, 0.0 }
 0x73b   :  { %v950_v46 = vadd.f32 %v1023_v43, %v941_v44  ;;  %v940_v47 = vmul.f32 %v1022_v37, %v931_v45 }
 0x73d   :  { %v952_v48 = vadd.f32 %v950_v46, %v1497_v52  ;;  %v954_v0 = vadd.f32 %v950_v46, %v1495_v51  ;;  %v949_v49 = vadd.f32 %v1023_v43, %v940_v47 }
 0x73f   :  { %v951_v50 = vadd.f32 %v949_v49, %v1487_v42  ;;  %v953_v53 = vadd.f32 %v949_v49, %v1485_v40  ;;  %v956_v54 = vsel %vm274_vm2, %v952_v48, -inf  ;;  %v965_v55 = vsel %vm274_vm2, %v954_v0, -inf }
 0x741   :  { %v955_v56 = vsel %vm274_vm2, %v951_v50, -inf  ;;  %v964_v57 = vsel %vm274_vm2, %v953_v53, -inf }
 0x742   :  { %v957_v58 = vmax.f32 %v955_v56, %v956_v54  ;;  %v966_v59 = vmax.f32 %v964_v57, %v965_v55 }
 0x744   :  { %v958_v60 = vrot.slane %v957_v58, 4  ;;  %v967_v61 = vrot.slane %v966_v59, 4 }
 0x746   :  { %v959_v52 = vmax.f32 %v957_v58, %v958_v60  ;;  %v968_v62 = vmax.f32 %v966_v59, %v967_v61 }
 0x748   :  { %v960_v51 = vrot.slane %v959_v52, 2  ;;  %v969_v63 = vrot.slane %v968_v62, 2 }
 0x74a   :  { %v961_v1 = vmax.f32 %v959_v52, %v960_v51  ;;  %v970_v42 = vmax.f32 %v968_v62, %v969_v63 }
 0x74c   :  { %v962_v3 = vrot.slane %v961_v1, 1  ;;  %v971_v40 = vrot.slane %v970_v42, 1 }
 0x74e   :  { %v963_v4 = vmax.f32 %v961_v1, %v962_v3  ;;  %v972_v5 = vmax.f32 %v970_v42, %v971_v40 }
 0x750   :  { %v975_v6 = vsel %vm420_vm3, %v972_v5, %v963_v4 }
 0x751   :  { %976 = vrot.lane.b32.xlu1 %v975_v6, %s1266_s27 }
 0x7c3   :  { %v977_v7 = vpop.permute.xlu1 %976 }
 0x7c4   :  { %980 = vst.msk [vmem:[#allocation7] sm:$0x3] %vm979_vm6, %v977_v7 }
 0x7c5   :  { %1250 = shalt.err (!%p1247_p0)
}
 0x7c6   :  { %990 = dma.vmem_to_hbm [thread:$0]  %s988_s19, 32, %s1638_s21, [#allocation4]  }
 0x7c7   :  { %1263 = dma.done.wait [#allocation4], 32  }
 0x7c8   :  { %1264 = vsyncadd [#allocation4], 4294967264 }
 0x7c9   :  { %994 = vsyncpa [#allocation3], 1 }
 0x7ca   :  { %995 = vsyncpa [#allocation6], 1 }
 0x7cb   :  { %996 = vsyncpa [#allocation4], 1 }

</bundles_post_ra>
